<compile_context>
chip_gen: v5e
topology: v5e:2x2
jax: 0.10.0
libtpu: 0.0.40
codegen_flags: <defaults>
</compile_context>

<pallas_src>
import jax
import jax.numpy as jnp
from jax.experimental import pallas as pl
from jax.experimental.pallas import tpu as pltpu


def _round_up(v, d):
    return ((v + d - 1) // d) * d


def _grouped_gram_kernel(tile_class_ref, x_ref, out_ref):
    """Accumulate G_c += X_tile.T @ X_tile into the current class's block.

    tile_class_ref: (n_tiles,) int32 SMEM — class id per m-tile (prefetched).
    x_ref:          (tm, P)    MXU dtype — one class-bucketed feature tile.
    out_ref:        (P, P)     float32   — Gram block of class tile_class[t].
    """
    t = pl.program_id(0)
    cls = tile_class_ref[t]
    prev = tile_class_ref[jnp.maximum(t - 1, 0)]
    is_first = jnp.logical_or(t == 0, cls != prev)

    x = x_ref[...]                                          # (tm, P)
    g = jax.lax.dot_general(
        x, x,
        dimension_numbers=(((0,), (0,)), ((), ())),         # X.T @ X on MXU
        preferred_element_type=jnp.float32)                 # (P, P) f32

    @pl.when(is_first)
    def _init():
        out_ref[...] = g

    @pl.when(jnp.logical_not(is_first))
    def _acc():
        out_ref[...] += g


def mcr2_class_grams(x, labels, num_classes, *, mxu_dtype=jnp.bfloat16,
                     tile_m=None):
    """Per-class unscaled Gram matrices G_j = (X * 1{y==j}).T @ X.

    x: (m, p) float; labels: (m,) int in [0, num_classes).
    Returns (num_classes, p, p) float32.
    """
    m, p = x.shape
    labels = labels.astype(jnp.int32)
    elem = jnp.dtype(mxu_dtype).itemsize

    # Lane-dense feature dim; zero columns are Gram/logdet-neutral.
    P = _round_up(max(p, 128), 128)

    # Chip VMEM capacity (v5e/v6e 128 MiB, v7x 64 MiB per TensorCore).
    try:
        chip_vmem = int(getattr(pltpu.get_tpu_info(), "vmem_capacity_bytes",
                                64 * 2**20))
    except Exception:
        chip_vmem = 64 * 2**20

    # Adaptive m-tile: ~2 MiB streamed tiles, bounded by per-class segment
    # size (limits class padding) and by the VMEM budget.
    if tile_m is None:
        target = max((2 * 2**20) // (P * elem), 128)
        per_class = _round_up(max(m // max(num_classes, 1), 1), 128)
        tm = int(max(128, min(target, per_class, 2048)))
    else:
        tm = int(max(128, tile_m))
    tm = _round_up(tm, 128)
    budget = int(chip_vmem * 0.7)
    while tm > 128 and (2 * tm * P * elem + 2 * P * P * 4) > budget:
        tm = max(128, tm // 2)
    # TODO(synk): for very large p (2*P*P*4 alone exceeding the budget) the
    # Gram's N dimension would additionally need tiling; not needed here.

    # Class-contiguous padded layout with STATIC shapes: each class segment is
    # padded to a multiple of tm (and at least tm so every class block gets
    # written); M_total is a data-independent upper bound.
    M_total = _round_up(m, tm) + num_classes * tm
    n_tiles = M_total // tm

    class_ids = jnp.arange(num_classes, dtype=jnp.int32)
    counts = jnp.sum((labels[:, None] == class_ids[None, :]).astype(jnp.int32),
                     axis=0)                                         # (k,)
    padded_counts = jnp.maximum(tm, ((counts + tm - 1) // tm) * tm)  # (k,)
    padded_starts = jnp.concatenate(
        [jnp.zeros((1,), jnp.int32),
         jnp.cumsum(padded_counts)[:-1].astype(jnp.int32)])          # (k,)
    class_starts = jnp.concatenate(
        [jnp.zeros((1,), jnp.int32),
         jnp.cumsum(counts)[:-1].astype(jnp.int32)])                 # (k,)

    # Within-class rank of every sample (one argsort), then scatter each row
    # straight into its padded, class-contiguous destination in the MXU dtype.
    order = jnp.argsort(labels)
    rank_sorted = jnp.arange(m, dtype=jnp.int32) - class_starts[labels[order]]
    rank = jnp.zeros((m,), jnp.int32).at[order].set(rank_sorted)
    dest = padded_starts[labels] + rank                              # (m,)

    x_cols = jnp.zeros((m, P), mxu_dtype).at[:, :p].set(x.astype(mxu_dtype))
    x_padded = jnp.zeros((M_total, P), mxu_dtype).at[dest].set(x_cols)

    # Class id of each m-tile.  Unused trailing tiles are all-zero rows and
    # are charged to the last class (harmless: they add zero to its Gram).
    tile_start = (padded_starts // tm).astype(jnp.int32)             # (k,)
    tile_ids = jnp.arange(n_tiles, dtype=jnp.int32)
    tile_class = jnp.sum(
        (tile_ids[:, None] >= tile_start[None, :]).astype(jnp.int32),
        axis=1) - 1
    tile_class = jnp.clip(tile_class, 0, num_classes - 1).astype(jnp.int32)

    flops = 2 * M_total * P * P
    bytes_accessed = (M_total * P * elem + n_tiles * 4
                      + num_classes * P * P * 4)
    vmem_est = 2 * tm * P * elem + 2 * P * P * 4
    vmem_limit = int(min(int(chip_vmem * 0.85),
                         max(32 * 2**20, 2 * vmem_est)))

    grid_spec = pltpu.PrefetchScalarGridSpec(
        num_scalar_prefetch=1,
        grid=(n_tiles,),
        in_specs=[pl.BlockSpec((tm, P), lambda t, tc: (t, 0))],
        out_specs=pl.BlockSpec((None, P, P), lambda t, tc: (tc[t], 0, 0)),
    )

    grams = pl.pallas_call(
        _grouped_gram_kernel,
        out_shape=jax.ShapeDtypeStruct((num_classes, P, P), jnp.float32),
        grid_spec=grid_spec,
        compiler_params=pltpu.CompilerParams(
            dimension_semantics=("arbitrary",),
            vmem_limit_bytes=vmem_limit),
        cost_estimate=pl.CostEstimate(
            flops=flops, transcendentals=0, bytes_accessed=bytes_accessed),
    )(tile_class, x_padded)

    return grams[:, :p, :p]


def maximal_coding_rate_reduction(X, Y, num_classes, gam1=1.0, gam2=1.0,
                                  eps=0.01, mxu_dtype=jnp.bfloat16):
    """Forward pass of MaximalCodingRateReduction.

    X: (m, p) float features, Y: (m,) int labels in [0, num_classes).
    Returns (total_loss, (discrimn_loss, compress_loss)).
    """
    X = X.astype(jnp.float32)
    Y = Y.astype(jnp.int32)
    m, p = X.shape

    class_ids = jnp.arange(num_classes, dtype=jnp.int32)
    counts = jnp.sum((Y[:, None] == class_ids[None, :]).astype(jnp.float32),
                     axis=0)                                         # (k,)
    trPi = counts + 1e-8                                             # (k,)

    grams = mcr2_class_grams(X, Y, num_classes, mxu_dtype=mxu_dtype)  # (k,p,p)

    # Labels in [0, num_classes) partition the samples, so W @ W.T == sum_j G_j
    # (note: out-of-range labels would silently drop rows from this term).
    gram_all = jnp.sum(grams, axis=0)                                # (p, p)

    I = jnp.eye(p, dtype=jnp.float32)
    compress_scalars = (p / (trPi * eps)).astype(jnp.float32)        # (k,)
    discrimn_scalar = jnp.float32(gam1 * p / (m * eps))

    M_compress = I + compress_scalars[:, None, None] * grams         # (k,p,p)
    M_discrimn = I + discrimn_scalar * gram_all                      # (p,p)

    # sgn * logabsdet matches torch.linalg.slogdet semantics exactly and is
    # robust even if rounding makes a matrix marginally non-PD.
    sgn_c, lad_c = jnp.linalg.slogdet(M_compress)                    # (k,)
    sgn_d, lad_d = jnp.linalg.slogdet(M_discrimn)                    # ()

    discrimn_loss = (sgn_d * lad_d) / 2.0
    compress_loss = jnp.sum((sgn_c * lad_c) * trPi / m) / 2.0
    total_loss = gam2 * (-discrimn_loss) + compress_loss
    return total_loss, (discrimn_loss, compress_loss)


def _reference(X, Y, num_classes, gam1=1.0, gam2=1.0, eps=0.01):
    """Pure-JAX reference mirroring the PyTorch module exactly (LU slogdet)."""
    X = X.astype(jnp.float32)
    m, p = X.shape
    W = X.T                                                          # (p, m)
    I = jnp.eye(p, dtype=jnp.float32)

    sgn, lad = jnp.linalg.slogdet(I + gam1 * (p / (m * eps)) * W @ W.T)
    discrimn = (sgn * lad) / 2.0

    onehot = jax.nn.one_hot(Y, num_classes, dtype=jnp.float32)
    compress = 0.0
    for j in range(num_classes):
        Pi_j = jnp.diag(onehot[:, j])
        trPi = jnp.trace(Pi_j) + 1e-8
        sgn, lad = jnp.linalg.slogdet(I + (p / (trPi * eps)) * W @ Pi_j @ W.T)
        compress = compress + (sgn * lad) * trPi / m
    compress = compress / 2.0
    return gam2 * (-discrimn) + compress, (discrimn, compress)


if __name__ == "__main__":
    key = jax.random.PRNGKey(0)
    kx, ky = jax.random.split(key)
    m, p, k = 64, 32, 4                       # samples, feature dim, classes
    X = jax.random.normal(kx, (m, p), dtype=jnp.float32)
    Y = jax.random.randint(ky, (m,), 0, k)

    ref_total, (ref_d, ref_c) = _reference(X, Y, num_classes=k)

    # f32-MXU path: tight semantic check against the PyTorch-mirroring ref.
    tot32, (d32, c32) = maximal_coding_rate_reduction(
        X, Y, num_classes=k, mxu_dtype=jnp.float32)
    jax.block_until_ready(tot32)
    assert jnp.allclose(tot32, ref_total, rtol=1e-3, atol=1e-2), (tot32, ref_total)
    assert jnp.allclose(d32, ref_d, rtol=1e-3, atol=1e-2), (d32, ref_d)
    assert jnp.allclose(c32, ref_c, rtol=1e-3, atol=1e-2), (c32, ref_c)

    # Default bf16-MXU path (f32 accumulation): validated loosely vs f32 ref.
    totb, (db, cb) = maximal_coding_rate_reduction(X, Y, num_classes=k)
    jax.block_until_ready(totb)
    assert jnp.allclose(totb, ref_total, rtol=5e-2, atol=0.5), (totb, ref_total)
    assert jnp.allclose(db, ref_d, rtol=5e-2, atol=0.5), (db, ref_d)
    assert jnp.allclose(cb, ref_c, rtol=5e-2, atol=0.5), (cb, ref_c)

    print("KERNEL_OK")
</pallas_src>

<mosaic_0001>
module attributes {stable_mosaic.version = 11 : i64} {
  func.func @_grouped_gram_kernel(%arg0: i32, %arg1: memref<5xi32, #tpu.memory_space<smem>>, %arg2: memref<128x128xf32, #tpu.memory_space<vmem>>, %arg3: memref<1x128x128xf32, #tpu.memory_space<vmem>>) attributes {dimension_semantics = [#tpu.dimension_semantics<arbitrary>], iteration_bounds = array<i64: 5>, scalar_prefetch = 1 : i64, scratch_operands = 0 : i64, tpu.core_type = #tpu.core_type<tc>, window_params = [{transform_indices = @transform_0, window_bounds = array<i64: 128, 128>}, {transform_indices = @transform_1, window_bounds = array<i64: 1, 128, 128>}]} {
    %0 = arith.index_cast %arg0 : i32 to index
    %1 = memref.load %arg1[%0] : memref<5xi32, #tpu.memory_space<smem>>
    %c1_i32 = arith.constant 1 : i32
    %2 = arith.subi %arg0, %c1_i32 : i32
    %c0_i32 = arith.constant 0 : i32
    %3 = arith.maxsi %2, %c0_i32 : i32
    %4 = arith.index_cast %3 : i32 to index
    %5 = memref.load %arg1[%4] : memref<5xi32, #tpu.memory_space<smem>>
    %c0_i32_0 = arith.constant 0 : i32
    %6 = arith.cmpi eq, %arg0, %c0_i32_0 : i32
    %7 = arith.cmpi ne, %1, %5 : i32
    %8 = arith.ori %6, %7 : i1
    %c0 = arith.constant 0 : index
    %c0_1 = arith.constant 0 : index
    %9 = vector.load %arg2[%c0, %c0_1] : memref<128x128xf32, #tpu.memory_space<vmem>>, vector<128x128xf32>
    %cst = arith.constant dense<0.000000e+00> : vector<128x128xf32>
    %10 = tpu.matmul %9, %9, %cst {dimension_numbers = #tpu.dot_dimension_numbers<[0], [0], [1], [1], [0, 1, 1, 1], [], []>} : vector<128x128xf32>, vector<128x128xf32>, vector<128x128xf32> -> vector<128x128xf32>
    %11 = arith.extui %8 : i1 to i32
    %c0_i32_2 = arith.constant 0 : i32
    %12 = arith.cmpi ne, %11, %c0_i32_2 : i32
    scf.if %12 {
      %c0_4 = arith.constant 0 : index
      %c0_5 = arith.constant 0 : index
      %c0_6 = arith.constant 0 : index
      %16 = vector.load %arg3[%c0_4, %c0_5, %c0_6] : memref<1x128x128xf32, #tpu.memory_space<vmem>>, vector<1x128x128xf32>
      %17 = vector.shape_cast %16 : vector<1x128x128xf32> to vector<128x128xf32>
      %18 = vector.shape_cast %10 : vector<128x128xf32> to vector<1x128x128xf32>
      tpu.vector_store %arg3[%c0_4, %c0_5, %c0_6], %18 {strides = array<i32>} : memref<1x128x128xf32, #tpu.memory_space<vmem>>, vector<1x128x128xf32>,
    } else {
    }
    %true = arith.constant true
    %13 = arith.xori %8, %true : i1
    %14 = arith.extui %13 : i1 to i32
    %c0_i32_3 = arith.constant 0 : i32
    %15 = arith.cmpi ne, %14, %c0_i32_3 : i32
    scf.if %15 {
      %c0_4 = arith.constant 0 : index
      %c0_5 = arith.constant 0 : index
      %c0_6 = arith.constant 0 : index
      %16 = vector.load %arg3[%c0_4, %c0_5, %c0_6] : memref<1x128x128xf32, #tpu.memory_space<vmem>>, vector<1x128x128xf32>
      %17 = vector.shape_cast %16 : vector<1x128x128xf32> to vector<128x128xf32>
      %18 = arith.addf %17, %10 : vector<128x128xf32>
      %c0_7 = arith.constant 0 : index
      %c0_8 = arith.constant 0 : index
      %c0_9 = arith.constant 0 : index
      %19 = vector.load %arg3[%c0_7, %c0_8, %c0_9] : memref<1x128x128xf32, #tpu.memory_space<vmem>>, vector<1x128x128xf32>
      %20 = vector.shape_cast %19 : vector<1x128x128xf32> to vector<128x128xf32>
      %21 = vector.shape_cast %18 : vector<128x128xf32> to vector<1x128x128xf32>
      tpu.vector_store %arg3[%c0_7, %c0_8, %c0_9], %21 {strides = array<i32>} : memref<1x128x128xf32, #tpu.memory_space<vmem>>, vector<1x128x128xf32>,
    } else {
    }
    return
  }
  func.func @transform_0(%arg0: i32, %arg1: memref<5xi32, #tpu.memory_space<smem>>) -> (i32, i32) {
    %c0_i32 = arith.constant 0 : i32
    %c0_i32_0 = arith.constant 0 : i32
    return %arg0, %c0_i32 : i32, i32
  }
  func.func @transform_1(%arg0: i32, %arg1: memref<5xi32, #tpu.memory_space<smem>>) -> (i32, i32, i32) {
    %0 = arith.index_cast %arg0 : i32 to index
    %1 = memref.load %arg1[%0] : memref<5xi32, #tpu.memory_space<smem>>
    %c0_i32 = arith.constant 0 : i32
    %c0_i32_0 = arith.constant 0 : i32
    %c0_i32_1 = arith.constant 0 : i32
    return %1, %c0_i32, %c0_i32_0 : i32, i32, i32
  }
}

</mosaic_0001>

<bundles_post_ra>
// kernel: tpu_custom_call.1
= control target key start
LH: loop header
LB: loop body
LE: loop exit
PB: predicated region body
PF: predicated region fallthrough
CT: control target
= control target key end

     0   :  { %s709_s12 = smov [#allocation3]   ;;  %s1049_s0 = inlined_call_operand.hbm [shape: s32[5], index: 0, kind: input, shape index: {}]   ;;  %s1050_s1 = inlined_call_operand.hbm [shape: f32[640,128], index: 1, kind: input, shape index: {}]   ;;  %s1051_s2 = inlined_call_operand.hbm [shape: f32[4,128,128], index: 2, kind: output, shape index: {}]  }
   0x1   :  { %s8_s11 = sshll.u32 %s1049_s0, 4  ;;  %s9_s11 = int_to_ptr.hbm [resolvable:$true] %s8_s11 }
   0x2   :  { %11 = dma.hbm_to_smem %s9_s11, 16, %s709_s12, [#allocation2] }
   0x3   :  { %671 = dma.done.wait [#allocation2], 16 }
   0x4   :  { %672 = vsyncadd [#allocation2], 4294967280 }
   0x5   :  { %14 = sfence }
   0x6   :  { %15 = vsyncpa [#allocation5], 0 }
   0x7   :  { %17 = vsyncpa [#allocation5 + $0x1], 0 }
   0x8   :  { %18 = vsyncpa [#allocation6], 0 }
   0x9   :  { %20 = vsyncpa [#allocation6 + $0x1], 0  ;;  %s732_s13 = smov 0   ;;  %s734_s14 = smov 0  }
   0xa   :  { %s736_s15 = smov 0   ;;  %s738_s16 = smov 0  }
   0xb   :  { %s740_s17 = smov 0   ;;  %s742_s0 = smov 0  }
   0xc   :  { %s744_s18 = smov 0  }
   0xd LB: > { %s766_s19 = sadd.s32 4294967295, %s707_s18   ;;  %s431_s20 = sadd.s32 4294967294, %s707_s18   ;;  %s707_s18 = sphi %s744_s18, %s1064_s18   ;;  %s703_s0 = sphi %s742_s0, %s1063_s0   ;;  %s699_s17 = sphi %s740_s17, %s1062_s17   ;;  %s695_s16 = sphi %s738_s16, %s1061_s16   ;;  %s691_s15 = sphi %s736_s15, %s1060_s15   ;;  %s687_s14 = sphi %s734_s14, %s1059_s14   ;;  %s683_s13 = sphi %s732_s13, %s1058_s13  }
   0xe   : > { %s770_s21 = sadd.s32 1, %s707_s18   ;;  %s33_s22 = sadd.s32 1, %s703_s0 }
   0xf   : > { %s30_s23 = ssub.s32 %s707_s18, %s770_s21  ;;  %p40_p0 = scmp.ne.s32.totalorder %s703_s0, %s699_s17 }
  0x10   : > { %p31_p1 = scmp.eq.s32.totalorder %s30_s23, 0  ;;  %p41_p2 = scmp.eq.s32.totalorder %s707_s18, 0 }
  0x11   : > { %p46_p3 = scmp.ne.s32.totalorder %s699_s17, %s695_s16  ;;  %p47_p4 = scmp.eq.s32.totalorder %s766_s19, 0 }
  0x12   : > { %s781_s24 = scalar_select %p31_p1, %s703_s0, %s33_s22  }
  0x13   : > { %p783_p5 = por %p41_p2, %p40_p0  ;;  %p789_p6 = por %p47_p4, %p46_p3 }
  0x14   : > { %s56_s27 = sld [smem:[#allocation3 + %s707_s18]]  ;;  %s61_s28 = sadd.s32 1, %s691_s15 }
  0x15   : > { %s57_s29 = sld [smem:[#allocation3 + %s770_s21]]  ;;  %p71_p7 = scmp.ne.s32.totalorder %s691_s15, %s687_s14 }
  0x16   : > { %p72_p8 = scmp.eq.s32.totalorder %s766_s19, 4  ;;  %p77_p9 = scmp.ne.s32.totalorder %s687_s14, %s683_s13 }
  0x17   : > { %p78_p10 = scmp.eq.s32.totalorder %s431_s20, 4  ;;  %p510_p12 = scmp.lt.s32.totalorder %s707_s18, 5 }
  0x18   : > { %p801_p11 = por %p72_p8, %p71_p7  ;;  %s98_s4 = sand.u32 1, %s703_s0  }
  0x19   : > { %p806_p13 = por %p78_p10, %p77_p9  ;;  %s434_s5 = sshll.u32 %s98_s4, 7 }
  0x1a   : > { %s446_s7 = sshll.u32 %s707_s18, 7  ;;  %s102_s11 = scalar_lea.vmem [#allocation4], %s434_s5 }
  0x1b   : > { %s58_s6 = ssub.s32 %s56_s27, %s57_s29  ;;  %s107_s10 = scalar_lea.hbm %s1050_s1, %s446_s7 }
  0x1c   : > { %p59_p0 = scmp.eq.s32.totalorder %s58_s6, 0  ;;  %s110_s12 = sshll.u32 %s102_s11, 4  ;;  %s111_s12 = int_to_ptr.vmem [resolvable:$true] %s110_s12 }
  0x1d   : > { %s108_s20 = sshll.u32 %s107_s10, 4  ;;  %p822_p1 = pnand %p510_p12, %p783_p5  ;;  %s109_s20 = int_to_ptr.hbm [resolvable:$true] %s108_s20 }
  0x1e   : > { %s816_s16 = scalar_select %p59_p0, %s691_s15, %s61_s28  }
  0x1f   : > { %p437_p2 = scmp.ge.s32.totalorder %s707_s18, 1  ;;  %s99_s23 = scalar_lea.sflag [#allocation5], %s98_s4 }
  0x20   : > { %s585_s27 = sshra.s32 %s109_s20, 4  ;;  %p589_p7 = pneg %p822_p1  ;;  %s586_s27 = int_to_ptr.hbm [resolvable:$true] %s585_s27 }
  0x21   : > { %s587_s29 = scalar_lea.hbm %s586_s27, 128  ;;  %s592_s25 = scalar_lea.hbm %s1050_s1, 640 }
  0x22   : > { %p588_p3 = scmp.ne.s32.totalorder %s586_s27, %s587_s29  ;;  %p593_p5 = scmp.lt.s32.totalorder %s586_s27, %s1050_s1 }
  0x23   : > { %p594_p10 = scmp.lt.s32.totalorder %s592_s25, %s587_s29 }
  0x24   : > { %p590_p8 = pnand %p589_p7, %p588_p3 }
  0x25   : > { %p595_p12 = por %p594_p10, %p593_p5 }
  0x26   : > { %p591_p9 = pneg %p590_p8 }
  0x28   : > { %p596_p0 = pnand %p595_p12, %p591_p9 }
  0x2a   : > { %599 = shalt.err (!%p596_p0)
}
  0x2b   : > { %s710_s4 = smov 128   ;;  %s711_s8 = smov 8  }
  0x2c   : > { %505 = dma.hbm_to_vmem [thread:$0]  (!%p822_p1), %s109_s20, 2048, %s111_s12, %s99_s23, %s710_s4, %s710_s4, %s711_s8  }
  0x2d   : > { %p118_p3 = scmp.lt.s32.totalorder %s707_s18, 6 }
  0x2f   : > { %p119_p7 = pnand %p437_p2, %p118_p3 }
  0x30   : > { %s124_s9 = sand.u32 (!%p119_p7), 1, %s699_s17  }
  0x31   : > { %122 = sbr.rel (%p119_p7) target bundleno = 522 (0x20a), region = 24  ;;  %s438_s10 = sshll.u32 (!%p119_p7), %s124_s9, 7 }
  0x32   : > { %s125_s11 = scalar_lea.sflag (!%p119_p7), [#allocation5], %s124_s9  ;;  %s841_s27 = scalar_lea.vmem (!%p119_p7), [#allocation4], %s438_s10 }
  0x36   : > { %674 = dma.done.wait (%p789_p6), %s125_s11, 2048  }
  0x37   : > { %676 = vsyncadd (%p789_p6), %s125_s11, 4294965248  ;;  %s440_s12 = sadd.s32 4294967295, %s766_s19  ;;  %s145_s20 = sand.u32 1, %s687_s14   ;;  %v855_v0 = vld [vmem:[%s841_s27] sm:$0xff]  ;;  %v865_v1 = vld [vmem:[%s841_s27 + $0x8] sm:$0xff] }
  0x38   : > { %p152_p1 = scmp.gt.s32.totalorder %s440_s12, 0  ;;  %s150_s22 = sld [smem:[#allocation3 + %s766_s19]]  ;;  %174 = vxpose.xlu0.b32.start [1/16] %v855_v0, 128  ;;  %v869_v2 = vld [vmem:[%s841_s27 + $0x10] sm:$0xff]  ;;  %v873_v3 = vld [vmem:[%s841_s27 + $0x18] sm:$0xff]  ;;  %v877_v4 = vld [vmem:[%s841_s27 + $0x20] sm:$0xff] }
  0x39   : > { %s852_s23 = sshll.u32 %s145_s20, 7  ;;  %v881_v5 = vld [vmem:[%s841_s27 + $0x28] sm:$0xff]  ;;  %v885_v6 = vld [vmem:[%s841_s27 + $0x30] sm:$0xff]  ;;  %v165_v7 = vld [vmem:[%s841_s27 + $0x38] sm:$0xff] }
  0x3a   : > { %s1066_s12 = smov (!%p152_p1, %s440_s12), 0  ;;  %v166_v8 = vld [vmem:[%s841_s27 + $0x40] sm:$0xff]  ;;  %v167_v9 = vld [vmem:[%s841_s27 + $0x48] sm:$0xff]  ;;  %v168_v10 = vld [vmem:[%s841_s27 + $0x50] sm:$0xff]  ;;  %s944_s28 = scalar_lea.vmem [#allocation7], %s852_s23 }
  0x3b   : > { %s154_s26 = sld [smem:[#allocation3 + %s1066_s12]]  ;;  %v893_v11 = vld [vmem:[%s841_s27 + $0x78] sm:$0xff]  ;;  %v898_v12 = vld [vmem:[%s841_s27 + $0x70] sm:$0xff]  ;;  %v171_v13 = vld [vmem:[%s841_s27 + $0x68] sm:$0xff] }
  0x3c   : > { %206 = vmatpush.msra.mxu0 %v893_v11  ;;  %448 = vmatpush.msra.mxu1 %v893_v11  ;;  %v169_v14 = vld [vmem:[%s841_s27 + $0x58] sm:$0xff]  ;;  %v170_v15 = vld [vmem:[%s841_s27 + $0x60] sm:$0xff] }
  0x3d   : > { %449 = vmatpush.msra.mxu2 %v893_v11  ;;  %450 = vmatpush.msra.mxu3 %v893_v11 }
  0x3e   : > { %207 = vmatpush.msra.mxu0 %v898_v12  ;;  %451 = vmatpush.msra.mxu1 %v898_v12 }
  0x3f   : > { %452 = vmatpush.msra.mxu2 %v898_v12  ;;  %453 = vmatpush.msra.mxu3 %v898_v12 }
  0x40   : > { %175 = vxpose.xlu0.b32.cont [2/16] %v865_v1, 128  ;;  %208 = vmatpush.msra.mxu0 %v171_v13 }
  0x41   : > { %p156_p6 = scmp.ne.s32.totalorder %s150_s22, %s154_s26  ;;  %454 = vmatpush.msra.mxu1 %v171_v13  ;;  %455 = vmatpush.msra.mxu2 %v171_v13 }
  0x42   : > { %456 = vmatpush.msra.mxu3 %v171_v13  ;;  %209 = vmatpush.msra.mxu0 %v170_v15 }
  0x43   : > { %p860_p2 = por %p156_p6, %p47_p4  ;;  %457 = vmatpush.msra.mxu1 %v170_v15  ;;  %458 = vmatpush.msra.mxu2 %v170_v15 }
  0x44   : > { %210 = vmatpush.msra.mxu0 %v169_v14  ;;  %459 = vmatpush.msra.mxu3 %v170_v15 }
  0x45   : > { %460 = vmatpush.msra.mxu1 %v169_v14  ;;  %461 = vmatpush.msra.mxu2 %v169_v14 }
  0x46   : > { %211 = vmatpush.msra.mxu0 %v168_v10  ;;  %462 = vmatpush.msra.mxu3 %v169_v14 }
  0x47   : > { %463 = vmatpush.msra.mxu1 %v168_v10  ;;  %464 = vmatpush.msra.mxu2 %v168_v10 }
  0x48   : > { %176 = vxpose.xlu0.b32.cont [3/16] %v869_v2, 128  ;;  %212 = vmatpush.msra.mxu0 %v167_v9 }
  0x49   : > { %466 = vmatpush.msra.mxu1 %v167_v9  ;;  %467 = vmatpush.msra.mxu2 %v167_v9 }
  0x4a   : > { %465 = vmatpush.msra.mxu3 %v168_v10  ;;  %213 = vmatpush.msra.mxu0 %v166_v8 }
  0x4b   : > { %469 = vmatpush.msra.mxu1 %v166_v8  ;;  %470 = vmatpush.msra.mxu2 %v166_v8 }
  0x4c   : > { %214 = vmatpush.msra.mxu0 %v165_v7  ;;  %468 = vmatpush.msra.mxu3 %v167_v9 }
  0x4d   : > { %472 = vmatpush.msra.mxu1 %v165_v7  ;;  %473 = vmatpush.msra.mxu2 %v165_v7 }
  0x4e   : > { %215 = vmatpush.msra.mxu0 %v885_v6  ;;  %471 = vmatpush.msra.mxu3 %v166_v8 }
  0x4f   : > { %475 = vmatpush.msra.mxu1 %v885_v6  ;;  %476 = vmatpush.msra.mxu2 %v885_v6 }
  0x50   : > { %177 = vxpose.xlu0.b32.cont [4/16] %v873_v3, 128  ;;  %216 = vmatpush.msra.mxu0 %v881_v5 }
  0x51   : > { %478 = vmatpush.msra.mxu1 %v881_v5  ;;  %479 = vmatpush.msra.mxu2 %v881_v5 }
  0x52   : > { %474 = vmatpush.msra.mxu3 %v165_v7  ;;  %217 = vmatpush.msra.mxu0 %v877_v4 }
  0x53   : > { %481 = vmatpush.msra.mxu1 %v877_v4  ;;  %482 = vmatpush.msra.mxu2 %v877_v4 }
  0x54   : > { %218 = vmatpush.msra.mxu0 %v873_v3  ;;  %477 = vmatpush.msra.mxu3 %v885_v6 }
  0x55   : > { %484 = vmatpush.msra.mxu1 %v873_v3  ;;  %485 = vmatpush.msra.mxu2 %v873_v3 }
  0x56   : > { %219 = vmatpush.msra.mxu0 %v869_v2  ;;  %480 = vmatpush.msra.mxu3 %v881_v5 }
  0x57   : > { %487 = vmatpush.msra.mxu1 %v869_v2  ;;  %488 = vmatpush.msra.mxu2 %v869_v2 }
  0x58   : > { %178 = vxpose.xlu0.b32.cont [5/16] %v877_v4, 128  ;;  %220 = vmatpush.msra.mxu0 %v865_v1 }
  0x59   : > { %490 = vmatpush.msra.mxu1 %v865_v1  ;;  %491 = vmatpush.msra.mxu2 %v865_v1 }
  0x5a   : > { %483 = vmatpush.msra.mxu3 %v877_v4  ;;  %221 = vmatpush.msra.mxu0 %v855_v0 }
  0x5b   : > { %493 = vmatpush.msra.mxu1 %v855_v0  ;;  %494 = vmatpush.msra.mxu2 %v855_v0 }
  0x5c   : > { %486 = vmatpush.msra.mxu3 %v873_v3 }
  0x5e   : > { %489 = vmatpush.msra.mxu3 %v869_v2 }
  0x60   : > { %179 = vxpose.xlu0.b32.cont [6/16] %v881_v5, 128  ;;  %492 = vmatpush.msra.mxu3 %v865_v1 }
  0x62   : > { %495 = vmatpush.msra.mxu3 %v855_v0 }
  0x68   : > { %180 = vxpose.xlu0.b32.cont [7/16] %v885_v6, 128 }
  0x70   : > { %181 = vxpose.xlu0.b32.cont [8/16] %v165_v7, 128 }
  0x78   : > { %182 = vxpose.xlu0.b32.cont [9/16] %v166_v8, 128 }
  0x80   : > { %183 = vxpose.xlu0.b32.cont [10/16] %v167_v9, 128 }
  0x88   : > { %184 = vxpose.xlu0.b32.cont [11/16] %v168_v10, 128 }
  0x90   : > { %185 = vxpose.xlu0.b32.cont [12/16] %v169_v14, 128 }
  0x98   : > { %186 = vxpose.xlu0.b32.cont [13/16] %v170_v15, 128 }
  0xa0   : > { %187 = vxpose.xlu0.b32.cont [14/16] %v171_v13, 128 }
  0xa8   : > { %188 = vxpose.xlu0.b32.cont [15/16] %v898_v12, 128 }
  0xb0   : > { %189 = vxpose.xlu0.b32.end [16/16] %v893_v11, 128 }
  0xdc   : > { %v190_v16 = vpop.trf.xlu0 }
  0xdd   : > { %222 = vmatmul.f32.vlgmr.msra.gmra.mxu0 %v190_v16 }
  0xe4   : > { %v191_v17 = vpop.trf.xlu0 }
  0xe5   : > { %225 = vmatmul.f32.gmra.mxu0 %v191_v17 }
  0xec   : > { %v192_v18 = vpop.trf.xlu0 }
  0xed   : > { %228 = vmatmul.f32.gmra.mxu0 %v192_v18 }
  0xf4   : > { %v193_v19 = vpop.trf.xlu0 }
  0xf5   : > { %231 = vmatmul.f32.gmra.mxu0 %v193_v19 }
  0xfc   : > { %v194_v20 = vpop.trf.xlu0 }
  0xfd   : > { %234 = vmatmul.f32.vlgmr.msra.gmra.mxu1 %v194_v20 }
 0x104   : > { %v195_v21 = vpop.trf.xlu0 }
 0x105   : > { %237 = vmatmul.f32.gmra.mxu1 %v195_v21 }
 0x10c   : > { %v196_v22 = vpop.trf.xlu0 }
 0x10d   : > { %240 = vmatmul.f32.gmra.mxu1 %v196_v22 }
 0x114   : > { %v197_v23 = vpop.trf.xlu0 }
 0x115   : > { %243 = vmatmul.f32.gmra.mxu1 %v197_v23 }
 0x11c   : > { %v198_v24 = vpop.trf.xlu0 }
 0x11d   : > { %246 = vmatmul.f32.vlgmr.msra.gmra.mxu2 %v198_v24 }
 0x124   : > { %v199_v25 = vpop.trf.xlu0 }
 0x125   : > { %249 = vmatmul.f32.gmra.mxu2 %v199_v25 }
 0x12c   : > { %v200_v26 = vpop.trf.xlu0 }
 0x12d   : > { %252 = vmatmul.f32.gmra.mxu2 %v200_v26 }
 0x134   : > { %v201_v27 = vpop.trf.xlu0 }
 0x135   : > { %255 = vmatmul.f32.gmra.mxu2 %v201_v27 }
 0x13c   : > { %v202_v28 = vpop.trf.xlu0 }
 0x13d   : > { %258 = vmatmul.f32.vlgmr.msra.gmra.mxu3 %v202_v28 }
 0x144   : > { %v203_v29 = vpop.trf.xlu0 }
 0x145   : > { %261 = vmatmul.f32.gmra.mxu3 %v203_v29 }
 0x14c   : > { %v204_v30 = vpop.trf.xlu0 }
 0x14d   : > { %264 = vmatmul.f32.gmra.mxu3 %v204_v30 }
 0x154   : > { %v205_v31 = vpop.trf.xlu0 }
 0x155   : > { %267 = vmatmul.f32.gmra.mxu3 %v205_v31 }
 0x15a   : > { %v223_v32 = vpop.f32.mrf.mxu0 }
 0x15b   : > { %274 = vst [vmem:[%s944_s28] sm:$0xff] (%p860_p2), %v223_v32 }
 0x162   : > { %v226_v33 = vpop.f32.mrf.mxu0 }
 0x163   : > { %275 = vst [vmem:[%s944_s28 + $0x8] sm:$0xff] (%p860_p2), %v226_v33 }
 0x16a   : > { %v229_v34 = vpop.f32.mrf.mxu0 }
 0x16b   : > { %276 = vst [vmem:[%s944_s28 + $0x10] sm:$0xff] (%p860_p2), %v229_v34 }
 0x172   : > { %v232_v35 = vpop.f32.mrf.mxu0 }
 0x173   : > { %277 = vst [vmem:[%s944_s28 + $0x18] sm:$0xff] (%p860_p2), %v232_v35 }
 0x17a   : > { %v235_v36 = vpop.f32.mrf.mxu1 }
 0x17b   : > { %278 = vst [vmem:[%s944_s28 + $0x20] sm:$0xff] (%p860_p2), %v235_v36 }
 0x182   : > { %v238_v37 = vpop.f32.mrf.mxu1 }
 0x183   : > { %279 = vst [vmem:[%s944_s28 + $0x28] sm:$0xff] (%p860_p2), %v238_v37 }
 0x18a   : > { %v241_v38 = vpop.f32.mrf.mxu1 }
 0x18b   : > { %280 = vst [vmem:[%s944_s28 + $0x30] sm:$0xff] (%p860_p2), %v241_v38 }
 0x192   : > { %v244_v39 = vpop.f32.mrf.mxu1 }
 0x193   : > { %281 = vst [vmem:[%s944_s28 + $0x38] sm:$0xff] (%p860_p2), %v244_v39 }
 0x1a0   : > { %v247_v40 = vpop.f32.mrf.mxu2 }
 0x1a1   : > { %282 = vst [vmem:[%s944_s28 + $0x40] sm:$0xff] (%p860_p2), %v247_v40 }
 0x1a8   : > { %v250_v41 = vpop.f32.mrf.mxu2 }
 0x1a9   : > { %283 = vst [vmem:[%s944_s28 + $0x48] sm:$0xff] (%p860_p2), %v250_v41 }
 0x1b0   : > { %v253_v42 = vpop.f32.mrf.mxu2 }
 0x1b1   : > { %284 = vst [vmem:[%s944_s28 + $0x50] sm:$0xff] (%p860_p2), %v253_v42 }
 0x1b8   : > { %v256_v43 = vpop.f32.mrf.mxu2 }
 0x1b9   : > { %285 = vst [vmem:[%s944_s28 + $0x58] sm:$0xff] (%p860_p2), %v256_v43 }
 0x1c0   : > { %v259_v44 = vpop.f32.mrf.mxu3 }
 0x1c1   : > { %286 = vst [vmem:[%s944_s28 + $0x60] sm:$0xff] (%p860_p2), %v259_v44 }
 0x1c8   : > { %v262_v45 = vpop.f32.mrf.mxu3 }
 0x1c9   : > { %287 = vst [vmem:[%s944_s28 + $0x68] sm:$0xff] (%p860_p2), %v262_v45 }
 0x1d0   : > { %v939_v46 = vpop.f32.mrf.mxu3 }
 0x1d1   : > { %288 = vst [vmem:[%s944_s28 + $0x70] sm:$0xff] (%p860_p2), %v939_v46 }
 0x1d4   : > { %273 = sbr.rel (!%p860_p2) target bundleno = 474 (0x1da), region = 32 }
 0x1d8   : > { %v941_v47 = vpop.f32.mrf.mxu3 }
 0x1d9   : > { %289 = vst [vmem:[%s944_s28 + $0x78] sm:$0xff] %v941_v47 }
 0x1da PF: > { %292 = sbr.rel (%p860_p2) target bundleno = 498 (0x1f2), region = 36 }
 0x1df   : > { %v293_v48 = vld [vmem:[%s944_s28] sm:$0xff]  ;;  %v294_v49 = vld [vmem:[%s944_s28 + $0x8] sm:$0xff]  ;;  %v295_v50 = vld [vmem:[%s944_s28 + $0x10] sm:$0xff] }
 0x1e0   : > { %v309_v51 = vadd.f32 %v293_v48, %v223_v32  ;;  %v310_v52 = vadd.f32 %v294_v49, %v226_v33  ;;  %v311_v53 = vadd.f32 %v295_v50, %v229_v34  ;;  %v296_v54 = vld [vmem:[%s944_s28 + $0x18] sm:$0xff]  ;;  %v297_v55 = vld [vmem:[%s944_s28 + $0x20] sm:$0xff]  ;;  %v298_v56 = vld [vmem:[%s944_s28 + $0x28] sm:$0xff] }
 0x1e1   : > { %v312_v57 = vadd.f32 %v296_v54, %v232_v35  ;;  %v299_v58 = vld [vmem:[%s944_s28 + $0x30] sm:$0xff]  ;;  %v313_v59 = vadd.f32 %v297_v55, %v235_v36  ;;  %v300_v60 = vld [vmem:[%s944_s28 + $0x38] sm:$0xff]  ;;  %v314_v61 = vadd.f32 %v298_v56, %v238_v37  ;;  %v301_v62 = vld [vmem:[%s944_s28 + $0x40] sm:$0xff] }
 0x1e2   : > { %325 = vst [vmem:[%s944_s28] sm:$0xff] %v309_v51  ;;  %v315_v63 = vadd.f32 %v299_v58, %v241_v38  ;;  %v302_v0 = vld [vmem:[%s944_s28 + $0x48] sm:$0xff]  ;;  %v316_v1 = vadd.f32 %v300_v60, %v244_v39  ;;  %v303_v2 = vld [vmem:[%s944_s28 + $0x50] sm:$0xff]  ;;  %v317_v3 = vadd.f32 %v301_v62, %v247_v40  ;;  %v304_v4 = vld [vmem:[%s944_s28 + $0x58] sm:$0xff] }
 0x1e3   : > { %326 = vst [vmem:[%s944_s28 + $0x8] sm:$0xff] %v310_v52  ;;  %v318_v5 = vadd.f32 %v302_v0, %v250_v41  ;;  %v305_v6 = vld [vmem:[%s944_s28 + $0x60] sm:$0xff]  ;;  %v319_v7 = vadd.f32 %v303_v2, %v253_v42  ;;  %v306_v8 = vld [vmem:[%s944_s28 + $0x68] sm:$0xff]  ;;  %v320_v9 = vadd.f32 %v304_v4, %v256_v43  ;;  %v307_v10 = vld [vmem:[%s944_s28 + $0x70] sm:$0xff] }
 0x1e4   : > { %327 = vst [vmem:[%s944_s28 + $0x10] sm:$0xff] %v311_v53  ;;  %v321_v11 = vadd.f32 %v305_v6, %v259_v44  ;;  %v308_v12 = vld [vmem:[%s944_s28 + $0x78] sm:$0xff]  ;;  %v322_v13 = vadd.f32 %v306_v8, %v262_v45  ;;  %v323_v14 = vadd.f32 %v307_v10, %v939_v46 }
 0x1e5   : > { %328 = vst [vmem:[%s944_s28 + $0x18] sm:$0xff] %v312_v57  ;;  %v324_v15 = vadd.f32 %v308_v12, %v941_v47 }
 0x1e6   : > { %329 = vst [vmem:[%s944_s28 + $0x20] sm:$0xff] %v313_v59 }
 0x1e7   : > { %330 = vst [vmem:[%s944_s28 + $0x28] sm:$0xff] %v314_v61 }
 0x1e8   : > { %331 = vst [vmem:[%s944_s28 + $0x30] sm:$0xff] %v315_v63 }
 0x1e9   : > { %332 = vst [vmem:[%s944_s28 + $0x38] sm:$0xff] %v316_v1 }
 0x1ea   : > { %333 = vst [vmem:[%s944_s28 + $0x40] sm:$0xff] %v317_v3 }
 0x1eb   : > { %334 = vst [vmem:[%s944_s28 + $0x48] sm:$0xff] %v318_v5 }
 0x1ec   : > { %335 = vst [vmem:[%s944_s28 + $0x50] sm:$0xff] %v319_v7 }
 0x1ed   : > { %336 = vst [vmem:[%s944_s28 + $0x58] sm:$0xff] %v320_v9 }
 0x1ee   : > { %337 = vst [vmem:[%s944_s28 + $0x60] sm:$0xff] %v321_v11 }
 0x1ef   : > { %338 = vst [vmem:[%s944_s28 + $0x68] sm:$0xff] %v322_v13 }
 0x1f0   : > { %339 = vst [vmem:[%s944_s28 + $0x70] sm:$0xff] %v323_v14 }
 0x1f1   : > { %340 = vst [vmem:[%s944_s28 + $0x78] sm:$0xff] %v324_v15 }
 0x1f2 PF: > { %s498_s5 = scalar_select %p801_p11, [#allocation3], [#allocation8] }
 0x1f3   : > { %s1068_s19 = smov (!%p801_p11, %s766_s19), 0  ;;  %s355_s6 = sshll.u32 %s944_s28, 4  ;;  %s356_s6 = int_to_ptr.vmem [resolvable:$true] %s355_s6 }
 0x1f4   : > { %s349_s25 = sld [smem:[%s498_s5 + %s1068_s19]]  ;;  %s342_s11 = scalar_lea.sflag [#allocation6], %s145_s20 }
 0x1f5   : > { %s635_s23 = scalar_lea.hbm %s1051_s2, 512 }
 0x1fa   : > { %s447_s7 = sshll.u32 %s349_s25, 7 }
 0x1fb   : > { %s354_s9 = scalar_lea.hbm %s1051_s2, %s447_s7 }
 0x1fc   : > { %s357_s10 = sshll.u32 %s354_s9, 4  ;;  %s358_s10 = int_to_ptr.hbm [resolvable:$true] %s357_s10 }
 0x1fd   : > { %s629_s27 = sshra.s32 %s358_s10, 4  ;;  %s630_s27 = int_to_ptr.hbm [resolvable:$true] %s629_s27 }
 0x1fe   : > { %s631_s12 = scalar_lea.hbm %s630_s27, 128  ;;  %p636_p5 = scmp.lt.s32.totalorder %s630_s27, %s1051_s2 }
 0x1ff   : > { %p632_p4 = scmp.ne.s32.totalorder %s630_s27, %s631_s12  ;;  %p637_p10 = scmp.lt.s32.totalorder %s635_s23, %s631_s12 }
 0x201   : > { %p633_p8 = pnand %p632_p4, %p801_p11  ;;  %p638_p12 = por %p637_p10, %p636_p5 }
 0x203   : > { %p634_p9 = pneg %p633_p8 }
 0x205   : > { %p639_p0 = pnand %p638_p12, %p634_p9 }
 0x207   : > { %642 = shalt.err (!%p639_p0)
}
 0x208   : > { %s712_s20 = smov 128   ;;  %s713_s28 = smov 8  }
 0x209   : > { %500 = dma.vmem_to_hbm [thread:$0]  (%p801_p11), %s356_s6, 2048, %s358_s10, %s342_s11, %s712_s20, %s712_s20, %s713_s28  }
 0x20a PF: > { %p511_p3 = scmp.ge.s32.totalorder %s707_s18, 2  ;;  %s372_s5 = sand.u32 1, %s683_s13  }
 0x20b   : > { %s373_s25 = scalar_lea.sflag [#allocation6], %s372_s5 }
 0x20c   : > { %p507_p7 = pnand %p511_p3, %p806_p13 }
 0x20e   : > { %p508_p1 = pneg %p507_p7 }
 0x210   : > { %678 = dma.done.wait (%p508_p1), %s373_s25, 2048  }
 0x211   : > { %680 = vsyncadd (%p508_p1), %s373_s25, 4294965248  ;;  %p23_p11 = scmp.ge.s32.totalorder %s770_s21, 7   ;;  %s1058_s13 = smov %s687_s14 }
 0x212   : > { %s1059_s14 = smov %s691_s15  ;;  %s1060_s15 = smov %s816_s16 }
 0x213   : > { %s1061_s16 = smov %s699_s17  ;;  %s1062_s17 = smov %s703_s0 }
 0x214   : > { %s1063_s0 = smov %s781_s24  ;;  %s1064_s18 = smov %s770_s21 }
 0x215   :  { %25 = sbr.rel (!%p23_p11) target bundleno = 13 (0xd), region = 77 }
 0x21a   :  { %379 = vsyncpa [#allocation5], 1 }
 0x21b   :  { %381 = vsyncpa [#allocation5 + $0x1], 1 }
 0x21c   :  { %382 = vsyncpa [#allocation6], 1 }
 0x21d   :  { %384 = vsyncpa [#allocation6 + $0x1], 1 }

</bundles_post_ra>
